<compile_context>
chip_gen: v7x
topology: tpu7x:2x2x1
jax: 0.10.0
libtpu: 0.0.40
codegen_flags: <defaults>
</compile_context>

<pallas_src>
import functools

import jax
import jax.numpy as jnp
from jax.experimental import pallas as pl
from jax.experimental.pallas import tpu as pltpu

NEG_SLOPE = 0.01  # PyTorch nn.LeakyReLU default negative_slope


def _round_up(n, m):
    return ((n + m - 1) // m) * m


def _ceil_div(a, b):
    return -(-a // b)


def _supports_bf16_vpu():
    """bf16 elementwise (VPU) is profitable on v6e/v7x; v5e has no bf16 VPU."""
    try:
        kind = jax.devices()[0].device_kind.lower()
    except Exception:
        return False
    return ("v6" in kind) or ("v7" in kind)


def _mlp_kernel(x_ref,
                w1_ref, b1_ref,
                w2_ref, b2_ref,
                w3_ref, b3_ref,
                w4_ref, b4_ref,
                w5_ref, b5_ref,
                o_ref, *, ew_dtype):
    """Fused 5-layer MLP forward for one batch tile.

    x_ref : (TB, input_dim)          f32 or bf16
    wN_ref: (in_N, out_N)            bf16 (MXU operands)
    bN_ref: (1, out_N)               f32 (cast to ew_dtype in-kernel; tiny)
    o_ref : (TB, out_dim_padded)     bf16 (lane-dense, halved writeback)
    """
    cdt = w1_ref.dtype  # MXU operand dtype (bf16)

    h = x_ref[...].astype(cdt)
    layers = ((w1_ref, b1_ref, True),
              (w2_ref, b2_ref, True),
              (w3_ref, b3_ref, True),
              (w4_ref, b4_ref, True),
              (w5_ref, b5_ref, False))
    for w_ref, b_ref, act in layers:
        # bf16 x bf16 -> f32 accumulate on the MXU.
        y = jnp.dot(h, w_ref[...], preferred_element_type=jnp.float32)
        # Bias + activation in ew_dtype (bf16 on v6e/v7x halves vregs & VALU ops).
        y = y.astype(ew_dtype) + b_ref[...].astype(ew_dtype)
        if act:
            # LeakyReLU as a single max: 2 VALU ops (mul+max) vs 3 (cmp+sel+mul).
            y = jnp.maximum(y, NEG_SLOPE * y)
            h = y.astype(cdt)          # bf16 only as a dot operand (no-op if ew=bf16)
        else:
            h = y
    o_ref[...] = h.astype(o_ref.dtype)


def init_params(key, input_dim, output_dim,
                weight_dtype=jnp.bfloat16, bias_dtype=jnp.float32):
    """Deterministic init mimicking PyTorch nn.Linear default
    (uniform(-1/sqrt(fan_in), 1/sqrt(fan_in)) for weight and bias).
    Weights stored transposed [in_features, out_features], in bf16 for the MXU.
    """
    dims = [(input_dim, 64), (64, 128), (128, 128), (128, 128), (128, output_dim)]
    params = []
    for i, (fan_in, fan_out) in enumerate(dims):
        kw, kb = jax.random.split(jax.random.fold_in(key, i))
        bound = 1.0 / float(fan_in) ** 0.5
        w = jax.random.uniform(kw, (fan_in, fan_out), jnp.float32, -bound, bound)
        b = jax.random.uniform(kb, (1, fan_out), jnp.float32, -bound, bound)
        params.append((w.astype(weight_dtype), b.astype(bias_dtype)))
    return params


@functools.partial(jax.jit, static_argnames=("tile_b", "bf16_elementwise"))
def _forward_impl(x, params, tile_b, bf16_elementwise):
    B, input_dim = x.shape
    output_dim = params[-1][0].shape[1]

    # ---- Pad the final layer's feature dim to a lane-dense multiple of 128 ----
    out_pad = _round_up(output_dim, 128)
    w5, b5 = params[-1]
    if out_pad != output_dim:
        w5 = jnp.pad(w5, ((0, 0), (0, out_pad - output_dim)))
        b5 = jnp.pad(b5, ((0, 0), (0, out_pad - output_dim)))
    padded_params = list(params[:-1]) + [(w5, b5)]

    # ---- Batch tiling: 128-aligned tiles, balanced across grid steps --------
    if B <= 128:
        tb = _round_up(B, 16)                   # tiny batch: one small tile
    else:
        steps = _ceil_div(B, tile_b)
        if B >= 256:
            steps = max(steps, 2)               # keep both v7x TensorCores busy
        tb = _round_up(_ceil_div(B, steps), 128)
    grid_b = _ceil_div(B, tb)
    padded_B = grid_b * tb
    if padded_B != B:
        x = jnp.pad(x, ((0, padded_B - B), (0, 0)))

    flat_params = []
    for w, b in padded_params:
        flat_params.extend([w, b])

    def x_map(i):
        return (i, 0)

    def const_map(i):
        return (0, 0)

    in_specs = [pl.BlockSpec((tb, input_dim), x_map)]
    for w, b in padded_params:
        in_specs.append(pl.BlockSpec(w.shape, const_map))
        in_specs.append(pl.BlockSpec(b.shape, const_map))
    out_dtype = jnp.bfloat16                    # half the HBM writeback / vst traffic
    out_spec = pl.BlockSpec((tb, out_pad), x_map)

    # Advisory cost estimate for the XLA scheduler.
    flops = 2 * padded_B * sum(w.shape[0] * w.shape[1] for w, _ in padded_params)
    bytes_accessed = (
        x.size * x.dtype.itemsize
        + sum(w.size * w.dtype.itemsize + b.size * b.dtype.itemsize
              for w, b in padded_params)
        + padded_B * out_pad * 2)               # bf16 output
    cost = pl.CostEstimate(flops=flops, transcendentals=0,
                           bytes_accessed=bytes_accessed)

    ew_dtype = jnp.bfloat16 if bf16_elementwise else jnp.float32
    kernel = functools.partial(_mlp_kernel, ew_dtype=ew_dtype)

    out = pl.pallas_call(
        kernel,
        out_shape=jax.ShapeDtypeStruct((padded_B, out_pad), out_dtype),
        grid=(grid_b,),
        in_specs=in_specs,
        out_specs=out_spec,
        compiler_params=pltpu.CompilerParams(
            dimension_semantics=("parallel",),   # shards grid steps across TCs (v7x)
            vmem_limit_bytes=32 * 1024 * 1024,   # headroom for big tiles on v5e
        ),
        cost_estimate=cost,
    )(x, *flat_params)

    return out[:B, :output_dim].astype(x.dtype)


def kernel_dncoder_forward(x, params, tile_b=1024, bf16_elementwise=None):
    """Fused-MLP Pallas forward. x: [B, input_dim]. Returns [B, output_dim] in x.dtype."""
    if bf16_elementwise is None:
        bf16_elementwise = _supports_bf16_vpu()
    return _forward_impl(x, params, tile_b=tile_b,
                         bf16_elementwise=bool(bf16_elementwise))


def reference_forward(x, params):
    """Pure-JAX f32 reference using the same (bf16-stored) weights."""
    h = x.astype(jnp.float32)
    for i, (w, b) in enumerate(params):
        h = h @ w.astype(jnp.float32) + b.astype(jnp.float32)
        if i < len(params) - 1:
            h = jnp.where(h >= 0, h, NEG_SLOPE * h)
    return h.astype(x.dtype)


if __name__ == "__main__":
    key = jax.random.PRNGKey(0)
    k_x, k_p = jax.random.split(key)

    B = 16          # batch
    INPUT_DIM = 32  # kernelDncoder input_dim (the N ctor arg is unused)
    OUTPUT_DIM = 16

    x = jax.random.normal(k_x, (B, INPUT_DIM), dtype=jnp.float32)
    params = init_params(k_p, INPUT_DIM, OUTPUT_DIM)

    out = kernel_dncoder_forward(x, params)
    out = jax.block_until_ready(out)

    ref = reference_forward(x, params)
    assert out.shape == (B, OUTPUT_DIM)
    # bf16 dot operands / bf16 elementwise (v6e/v7x) / bf16 store vs f32 reference.
    assert jnp.allclose(out, ref, atol=5e-2, rtol=5e-2), "mismatch vs reference"

    print("KERNEL_OK")
</pallas_src>

<mosaic_0001>
module attributes {stable_mosaic.version = 11 : i64} {
  func.func @_mlp_kernel(%arg0: i32, %arg1: memref<16x32xf32, #tpu.memory_space<vmem>>, %arg2: memref<32x64xbf16, #tpu.memory_space<vmem>>, %arg3: memref<1x64xf32, #tpu.memory_space<vmem>>, %arg4: memref<64x128xbf16, #tpu.memory_space<vmem>>, %arg5: memref<1x128xf32, #tpu.memory_space<vmem>>, %arg6: memref<128x128xbf16, #tpu.memory_space<vmem>>, %arg7: memref<1x128xf32, #tpu.memory_space<vmem>>, %arg8: memref<128x128xbf16, #tpu.memory_space<vmem>>, %arg9: memref<1x128xf32, #tpu.memory_space<vmem>>, %arg10: memref<128x128xbf16, #tpu.memory_space<vmem>>, %arg11: memref<1x128xf32, #tpu.memory_space<vmem>>, %arg12: memref<16x128xbf16, #tpu.memory_space<vmem>>) attributes {dimension_semantics = [#tpu.dimension_semantics<parallel>], iteration_bounds = array<i64: 1>, scalar_prefetch = 0 : i64, scratch_operands = 0 : i64, tpu.core_type = #tpu.core_type<tc>, window_params = [{transform_indices = @transform_0, window_bounds = array<i64: 16, 32>}, {pipeline_mode = #tpu.pipeline_mode<synchronous>, transform_indices = @transform_1, window_bounds = array<i64: 32, 64>}, {pipeline_mode = #tpu.pipeline_mode<synchronous>, transform_indices = @transform_2, window_bounds = array<i64: 1, 64>}, {pipeline_mode = #tpu.pipeline_mode<synchronous>, transform_indices = @transform_3, window_bounds = array<i64: 64, 128>}, {pipeline_mode = #tpu.pipeline_mode<synchronous>, transform_indices = @transform_4, window_bounds = array<i64: 1, 128>}, {pipeline_mode = #tpu.pipeline_mode<synchronous>, transform_indices = @transform_5, window_bounds = array<i64: 128, 128>}, {pipeline_mode = #tpu.pipeline_mode<synchronous>, transform_indices = @transform_6, window_bounds = array<i64: 1, 128>}, {pipeline_mode = #tpu.pipeline_mode<synchronous>, transform_indices = @transform_7, window_bounds = array<i64: 128, 128>}, {pipeline_mode = #tpu.pipeline_mode<synchronous>, transform_indices = @transform_8, window_bounds = array<i64: 1, 128>}, {pipeline_mode = #tpu.pipeline_mode<synchronous>, transform_indices = @transform_9, window_bounds = array<i64: 128, 128>}, {pipeline_mode = #tpu.pipeline_mode<synchronous>, transform_indices = @transform_10, window_bounds = array<i64: 1, 128>}, {transform_indices = @transform_11, window_bounds = array<i64: 16, 128>}]} {
    %c0 = arith.constant 0 : index
    %c0_0 = arith.constant 0 : index
    %0 = vector.load %arg1[%c0, %c0_0] : memref<16x32xf32, #tpu.memory_space<vmem>>, vector<16x32xf32>
    %1 = arith.truncf %0 : vector<16x32xf32> to vector<16x32xbf16>
    %c0_1 = arith.constant 0 : index
    %c0_2 = arith.constant 0 : index
    %2 = vector.load %arg2[%c0_1, %c0_2] : memref<32x64xbf16, #tpu.memory_space<vmem>>, vector<32x64xbf16>
    %cst = arith.constant dense<0.000000e+00> : vector<16x64xf32>
    %3 = tpu.matmul %1, %2, %cst {dimension_numbers = #tpu.dot_dimension_numbers<[1], [0], [0], [1], [0, 0, 1, 1], [], []>} : vector<16x32xbf16>, vector<32x64xbf16>, vector<16x64xf32> -> vector<16x64xf32>
    %c0_3 = arith.constant 0 : index
    %c0_4 = arith.constant 0 : index
    %4 = vector.load %arg3[%c0_3, %c0_4] : memref<1x64xf32, #tpu.memory_space<vmem>>, vector<1x64xf32>
    %5 = vector.broadcast %4 : vector<1x64xf32> to vector<16x64xf32>
    %6 = arith.addf %3, %5 : vector<16x64xf32>
    %cst_5 = arith.constant 0.00999999977 : f32
    %7 = vector.broadcast %cst_5 : f32 to vector<16x64xf32>
    %8 = arith.mulf %7, %6 : vector<16x64xf32>
    %9 = arith.maximumf %6, %8 : vector<16x64xf32>
    %10 = arith.truncf %9 : vector<16x64xf32> to vector<16x64xbf16>
    %c0_6 = arith.constant 0 : index
    %c0_7 = arith.constant 0 : index
    %11 = vector.load %arg4[%c0_6, %c0_7] : memref<64x128xbf16, #tpu.memory_space<vmem>>, vector<64x128xbf16>
    %cst_8 = arith.constant dense<0.000000e+00> : vector<16x128xf32>
    %12 = tpu.matmul %10, %11, %cst_8 {dimension_numbers = #tpu.dot_dimension_numbers<[1], [0], [0], [1], [0, 0, 1, 1], [], []>} : vector<16x64xbf16>, vector<64x128xbf16>, vector<16x128xf32> -> vector<16x128xf32>
    %c0_9 = arith.constant 0 : index
    %c0_10 = arith.constant 0 : index
    %13 = vector.load %arg5[%c0_9, %c0_10] : memref<1x128xf32, #tpu.memory_space<vmem>>, vector<1x128xf32>
    %14 = vector.broadcast %13 : vector<1x128xf32> to vector<16x128xf32>
    %15 = arith.addf %12, %14 : vector<16x128xf32>
    %cst_11 = arith.constant 0.00999999977 : f32
    %16 = vector.broadcast %cst_11 : f32 to vector<16x128xf32>
    %17 = arith.mulf %16, %15 : vector<16x128xf32>
    %18 = arith.maximumf %15, %17 : vector<16x128xf32>
    %19 = arith.truncf %18 : vector<16x128xf32> to vector<16x128xbf16>
    %c0_12 = arith.constant 0 : index
    %c0_13 = arith.constant 0 : index
    %20 = vector.load %arg6[%c0_12, %c0_13] : memref<128x128xbf16, #tpu.memory_space<vmem>>, vector<128x128xbf16>
    %cst_14 = arith.constant dense<0.000000e+00> : vector<16x128xf32>
    %21 = tpu.matmul %19, %20, %cst_14 {dimension_numbers = #tpu.dot_dimension_numbers<[1], [0], [0], [1], [0, 0, 1, 1], [], []>} : vector<16x128xbf16>, vector<128x128xbf16>, vector<16x128xf32> -> vector<16x128xf32>
    %c0_15 = arith.constant 0 : index
    %c0_16 = arith.constant 0 : index
    %22 = vector.load %arg7[%c0_15, %c0_16] : memref<1x128xf32, #tpu.memory_space<vmem>>, vector<1x128xf32>
    %23 = vector.broadcast %22 : vector<1x128xf32> to vector<16x128xf32>
    %24 = arith.addf %21, %23 : vector<16x128xf32>
    %cst_17 = arith.constant 0.00999999977 : f32
    %25 = vector.broadcast %cst_17 : f32 to vector<16x128xf32>
    %26 = arith.mulf %25, %24 : vector<16x128xf32>
    %27 = arith.maximumf %24, %26 : vector<16x128xf32>
    %28 = arith.truncf %27 : vector<16x128xf32> to vector<16x128xbf16>
    %c0_18 = arith.constant 0 : index
    %c0_19 = arith.constant 0 : index
    %29 = vector.load %arg8[%c0_18, %c0_19] : memref<128x128xbf16, #tpu.memory_space<vmem>>, vector<128x128xbf16>
    %cst_20 = arith.constant dense<0.000000e+00> : vector<16x128xf32>
    %30 = tpu.matmul %28, %29, %cst_20 {dimension_numbers = #tpu.dot_dimension_numbers<[1], [0], [0], [1], [0, 0, 1, 1], [], []>} : vector<16x128xbf16>, vector<128x128xbf16>, vector<16x128xf32> -> vector<16x128xf32>
    %c0_21 = arith.constant 0 : index
    %c0_22 = arith.constant 0 : index
    %31 = vector.load %arg9[%c0_21, %c0_22] : memref<1x128xf32, #tpu.memory_space<vmem>>, vector<1x128xf32>
    %32 = vector.broadcast %31 : vector<1x128xf32> to vector<16x128xf32>
    %33 = arith.addf %30, %32 : vector<16x128xf32>
    %cst_23 = arith.constant 0.00999999977 : f32
    %34 = vector.broadcast %cst_23 : f32 to vector<16x128xf32>
    %35 = arith.mulf %34, %33 : vector<16x128xf32>
    %36 = arith.maximumf %33, %35 : vector<16x128xf32>
    %37 = arith.truncf %36 : vector<16x128xf32> to vector<16x128xbf16>
    %c0_24 = arith.constant 0 : index
    %c0_25 = arith.constant 0 : index
    %38 = vector.load %arg10[%c0_24, %c0_25] : memref<128x128xbf16, #tpu.memory_space<vmem>>, vector<128x128xbf16>
    %cst_26 = arith.constant dense<0.000000e+00> : vector<16x128xf32>
    %39 = tpu.matmul %37, %38, %cst_26 {dimension_numbers = #tpu.dot_dimension_numbers<[1], [0], [0], [1], [0, 0, 1, 1], [], []>} : vector<16x128xbf16>, vector<128x128xbf16>, vector<16x128xf32> -> vector<16x128xf32>
    %c0_27 = arith.constant 0 : index
    %c0_28 = arith.constant 0 : index
    %40 = vector.load %arg11[%c0_27, %c0_28] : memref<1x128xf32, #tpu.memory_space<vmem>>, vector<1x128xf32>
    %41 = vector.broadcast %40 : vector<1x128xf32> to vector<16x128xf32>
    %42 = arith.addf %39, %41 : vector<16x128xf32>
    %43 = arith.truncf %42 : vector<16x128xf32> to vector<16x128xbf16>
    %c0_29 = arith.constant 0 : index
    %c0_30 = arith.constant 0 : index
    %44 = vector.load %arg12[%c0_29, %c0_30] : memref<16x128xbf16, #tpu.memory_space<vmem>>, vector<16x128xbf16>
    tpu.vector_store %arg12[%c0_29, %c0_30], %43 {strides = array<i32>} : memref<16x128xbf16, #tpu.memory_space<vmem>>, vector<16x128xbf16>,
    return
  }
  func.func @transform_0(%arg0: i32) -> (i32, i32) {
    %c0_i32 = arith.constant 0 : i32
    %c0_i32_0 = arith.constant 0 : i32
    return %arg0, %c0_i32 : i32, i32
  }
  func.func @transform_1(%arg0: i32) -> (i32, i32) {
    %c0_i32 = arith.constant 0 : i32
    %c0_i32_0 = arith.constant 0 : i32
    %c0_i32_1 = arith.constant 0 : i32
    return %c0_i32, %c0_i32_0 : i32, i32
  }
  func.func @transform_2(%arg0: i32) -> (i32, i32) {
    %c0_i32 = arith.constant 0 : i32
    %c0_i32_0 = arith.constant 0 : i32
    %c0_i32_1 = arith.constant 0 : i32
    return %c0_i32, %c0_i32_0 : i32, i32
  }
  func.func @transform_3(%arg0: i32) -> (i32, i32) {
    %c0_i32 = arith.constant 0 : i32
    %c0_i32_0 = arith.constant 0 : i32
    %c0_i32_1 = arith.constant 0 : i32
    return %c0_i32, %c0_i32_0 : i32, i32
  }
  func.func @transform_4(%arg0: i32) -> (i32, i32) {
    %c0_i32 = arith.constant 0 : i32
    %c0_i32_0 = arith.constant 0 : i32
    %c0_i32_1 = arith.constant 0 : i32
    return %c0_i32, %c0_i32_0 : i32, i32
  }
  func.func @transform_5(%arg0: i32) -> (i32, i32) {
    %c0_i32 = arith.constant 0 : i32
    %c0_i32_0 = arith.constant 0 : i32
    %c0_i32_1 = arith.constant 0 : i32
    return %c0_i32, %c0_i32_0 : i32, i32
  }
  func.func @transform_6(%arg0: i32) -> (i32, i32) {
    %c0_i32 = arith.constant 0 : i32
    %c0_i32_0 = arith.constant 0 : i32
    %c0_i32_1 = arith.constant 0 : i32
    return %c0_i32, %c0_i32_0 : i32, i32
  }
  func.func @transform_7(%arg0: i32) -> (i32, i32) {
    %c0_i32 = arith.constant 0 : i32
    %c0_i32_0 = arith.constant 0 : i32
    %c0_i32_1 = arith.constant 0 : i32
    return %c0_i32, %c0_i32_0 : i32, i32
  }
  func.func @transform_8(%arg0: i32) -> (i32, i32) {
    %c0_i32 = arith.constant 0 : i32
    %c0_i32_0 = arith.constant 0 : i32
    %c0_i32_1 = arith.constant 0 : i32
    return %c0_i32, %c0_i32_0 : i32, i32
  }
  func.func @transform_9(%arg0: i32) -> (i32, i32) {
    %c0_i32 = arith.constant 0 : i32
    %c0_i32_0 = arith.constant 0 : i32
    %c0_i32_1 = arith.constant 0 : i32
    return %c0_i32, %c0_i32_0 : i32, i32
  }
  func.func @transform_10(%arg0: i32) -> (i32, i32) {
    %c0_i32 = arith.constant 0 : i32
    %c0_i32_0 = arith.constant 0 : i32
    %c0_i32_1 = arith.constant 0 : i32
    return %c0_i32, %c0_i32_0 : i32, i32
  }
  func.func @transform_11(%arg0: i32) -> (i32, i32) {
    %c0_i32 = arith.constant 0 : i32
    %c0_i32_0 = arith.constant 0 : i32
    return %arg0, %c0_i32 : i32, i32
  }
}

</mosaic_0001>

<bundles_post_ra>
// kernel: _forward_impl.1
= control target key start
LH: loop header
LB: loop body
LE: loop exit
PB: predicated region body
PF: predicated region fallthrough
CT: control target
= control target key end

     0   :  { %v757_v0 = vmov 0.0   ;;  %vm758_vm0 = vmmov 0   ;;  %vm65_vm1 = vcmask 261120   ;;  %vm154_vm2 = vcmask 523264   ;;  %s973_s1 = inlined_call_operand.vmem [shape: bf16[32,64], index: 1, kind: input, shape index: {}]   ;;  %s974_s0 = inlined_call_operand.vmem [shape: f32[16,32], index: 0, kind: input, shape index: {}]   ;;  %s975_s3 = inlined_call_operand.vmem [shape: bf16[64,128], index: 3, kind: input, shape index: {}]   ;;  %s976_s5 = inlined_call_operand.vmem [shape: bf16[128,128], index: 5, kind: input, shape index: {}]   ;;  %s977_s2 = inlined_call_operand.vmem [shape: f32[1,64], index: 2, kind: input, shape index: {}]   ;;  %s978_s7 = inlined_call_operand.vmem [shape: bf16[128,128], index: 7, kind: input, shape index: {}]   ;;  %s979_s4 = inlined_call_operand.vmem [shape: f32[1,128], index: 4, kind: input, shape index: {}]   ;;  %s980_s9 = inlined_call_operand.vmem [shape: bf16[128,128], index: 9, kind: input, shape index: {}]   ;;  %s981_s6 = inlined_call_operand.vmem [shape: f32[1,128], index: 6, kind: input, shape index: {}]   ;;  %s982_s8 = inlined_call_operand.vmem [shape: f32[1,128], index: 8, kind: input, shape index: {}]   ;;  %s983_s10 = inlined_call_operand.vmem [shape: f32[1,128], index: 10, kind: input, shape index: {}]   ;;  %s984_s11 = inlined_call_operand.vmem [shape: bf16[16,128], index: 11, kind: output, shape index: {}]  }
   0x1   :  { %645 = vmatprep.subr.bf16.mxu1 %v757_v0  ;;  %v727_v1 = vld [vmem:[%s973_s1] sm:$0xff]   ;;  %649 = vmatprep.mubr.msk.bf16.mxu1 %vm758_vm0, %v757_v0  ;;  %v728_v2 = vld [vmem:[%s973_s1 + $0x8] sm:$0xff]   ;;  %v731_v8 = vld [vmem:[%s975_s3 + $0x10] sm:$0xff]  }
   0x2   :  { %665 = vmatprep.subr.bf16.mxu0 %v757_v0  ;;  %681 = vmatprep.mubr.msk.bf16.mxu0 %vm758_vm0, %v757_v0  ;;  %v39_v3 = vld [vmem:[%s974_s0] sm:$0xff]  ;;  %v40_v4 = vld [vmem:[%s974_s0 + $0x8] sm:$0xff]  ;;  %v732_v9 = vld [vmem:[%s975_s3 + $0x18] sm:$0xff]  }
   0x3   :  { %646 = vmatpush3.bf16.msra.mxu1 %v727_v1  ;;  %v41_v5 = vpack.c.bf16 %v40_v4, %v39_v3  ;;  %v729_v6 = vld [vmem:[%s975_s3] sm:$0xff]   ;;  %v730_v7 = vld [vmem:[%s975_s3 + $0x8] sm:$0xff]   ;;  %v735_v12 = vld [vmem:[%s976_s5 + $0x10] sm:$0xff]  }
   0x4   :  { %647 = vmatprep.subr.bf16.mxu1 %v757_v0  ;;  %v733_v10 = vld [vmem:[%s976_s5] sm:$0xff]   ;;  %v734_v11 = vld [vmem:[%s976_s5 + $0x8] sm:$0xff]   ;;  %v736_v13 = vld [vmem:[%s976_s5 + $0x18] sm:$0xff]  }
   0x5   :  { %666 = vmatpush3.bf16.msra.mxu0 %v733_v10  ;;  %v737_v14 = vld [vmem:[%s976_s5 + $0x20] sm:$0xff]   ;;  %v738_v27 = vld [vmem:[%s976_s5 + $0x28] sm:$0xff]   ;;  %v739_v28 = vld [vmem:[%s976_s5 + $0x30] sm:$0xff]  }
   0x6   :  { %667 = vmatprep.subr.bf16.mxu0 %v757_v0  ;;  %v564_v15 = vld [vmem:[%s977_s2] ss:$0 sm:$0xff]  ;;  %v740_v29 = vld [vmem:[%s976_s5 + $0x38] sm:$0xff]   ;;  %v742_v31 = vld [vmem:[%s978_s7 + $0x8] sm:$0xff]  }
   0x7   :  { %648 = vmatpush3.bf16.msra.mxu1 %v728_v2  ;;  %v741_v30 = vld [vmem:[%s978_s7] sm:$0xff]   ;;  %v743_v32 = vld [vmem:[%s978_s7 + $0x10] sm:$0xff]   ;;  %v744_v33 = vld [vmem:[%s978_s7 + $0x18] sm:$0xff]  }
   0x8   :  { %653 = vmatprep.subr.bf16.mxu1 %v757_v0  ;;  %v745_v34 = vld [vmem:[%s978_s7 + $0x20] sm:$0xff]   ;;  %v746_v47 = vld [vmem:[%s978_s7 + $0x28] sm:$0xff]   ;;  %v747_v48 = vld [vmem:[%s978_s7 + $0x30] sm:$0xff]  }
   0x9   :  { %668 = vmatpush3.bf16.msra.mxu0 %v734_v11  ;;  %v568_v35 = vld [vmem:[%s979_s4] ss:$0 sm:$0xff]  ;;  %v748_v49 = vld [vmem:[%s978_s7 + $0x38] sm:$0xff]   ;;  %v750_v51 = vld [vmem:[%s980_s9 + $0x8] sm:$0xff]  }
   0xa   :  { %650 = vmatmul.mubr.msk.bf16.vlgmr.msra.gmra.mrb[0].mxu1 %vm65_vm1, %v41_v5  ;;  %669 = vmatprep.subr.bf16.mxu0 %v757_v0  ;;  %v749_v50 = vld [vmem:[%s980_s9] sm:$0xff]   ;;  %v751_v52 = vld [vmem:[%s980_s9 + $0x10] sm:$0xff]   ;;  %v752_v53 = vld [vmem:[%s980_s9 + $0x18] sm:$0xff]  }
   0xb   :  { %654 = vmatpush3.bf16.msra.mxu1 %v729_v6  ;;  %661 = vmatprep.mubr.msk.bf16.mxu1 %vm758_vm0, %v757_v0  ;;  %v753_v54 = vld [vmem:[%s980_s9 + $0x20] sm:$0xff]   ;;  %v754_v4 = vld [vmem:[%s980_s9 + $0x28] sm:$0xff]   ;;  %v755_v5 = vld [vmem:[%s980_s9 + $0x30] sm:$0xff]  }
   0xc   :  { %655 = vmatprep.subr.bf16.mxu1 %v757_v0  ;;  %v574_v55 = vld [vmem:[%s981_s6] ss:$0 sm:$0xff]  ;;  %v756_v6 = vld [vmem:[%s980_s9 + $0x38] sm:$0xff]  }
   0xd   :  { %670 = vmatpush3.bf16.msra.mxu0 %v735_v12 }
   0xe   :  { %671 = vmatprep.subr.bf16.mxu0 %v757_v0 }
   0xf   :  { %656 = vmatpush3.bf16.msra.mxu1 %v730_v7  ;;  %v583_v7 = vld [vmem:[%s982_s8] ss:$0 sm:$0xff] }
  0x10   :  { %657 = vmatprep.subr.bf16.mxu1 %v757_v0 }
  0x11   :  { %672 = vmatpush3.bf16.msra.mxu0 %v736_v13 }
  0x12   :  { %673 = vmatprep.subr.bf16.mxu0 %v757_v0 }
  0x13   :  { %658 = vmatpush3.bf16.msra.mxu1 %v731_v8 }
  0x14   :  { %659 = vmatprep.subr.bf16.mxu1 %v757_v0 }
  0x15   :  { %674 = vmatpush3.bf16.msra.mxu0 %v737_v14 }
  0x16   :  { %675 = vmatprep.subr.bf16.mxu0 %v757_v0 }
  0x17   :  { %660 = vmatpush3.bf16.msra.mxu1 %v732_v9 }
  0x18   :  { %685 = vmatprep.subr.bf16.mxu1 %v757_v0 }
  0x19   :  { %676 = vmatpush3.bf16.msra.mxu0 %v738_v27 }
  0x1a   :  { %677 = vmatprep.subr.bf16.mxu0 %v757_v0 }
  0x1d   :  { %678 = vmatpush3.bf16.msra.mxu0 %v739_v28 }
  0x1e   :  { %679 = vmatprep.subr.bf16.mxu0 %v757_v0 }
  0x21   :  { %680 = vmatpush3.bf16.msra.mxu0 %v740_v29 }
  0x22   :  { %705 = vmatprep.subr.bf16.mxu0 %v757_v0 }
  0xdd   :  { %v103_v16 = vpop.f32.mrb[0].mxu1 }
  0xde   :  { %v104_v17 = vadd.f32 %v564_v15, %v103_v16  ;;  %v651_v18 = vpop.f32.mrb[1].mxu1 }
  0xdf   :  { %v106_v19 = vpop.f32.mrb[2].mxu1  ;;  %v592_v18 = vld [vmem:[%s983_s10] ss:$0 sm:$0xff] }
  0xe0   :  { %v110_v20 = vmul.f32 0.01, %v104_v17  ;;  %v107_v21 = vadd.f32 %v564_v15, %v106_v19  ;;  %v652_v22 = vpop.f32.mrb[3].mxu1 }
  0xe2   :  { %v111_v23 = vmul.f32 0.01, %v107_v21  ;;  %v112_v24 = vmax.f32 %v104_v17, %v110_v20 }
  0xe4   :  { %v113_v25 = vmax.f32 %v107_v21, %v111_v23 }
  0xe6   :  { %v114_v26 = vpack.c.bf16 %v113_v25, %v112_v24 }
  0xe8   :  { %662 = vmatmul.mubr.msk.bf16.vlgmr.msra.gmra.mrb[4].mxu1 %vm154_vm2, %v114_v26 }
  0xe9   :  { %701 = vmatprep.mubr.msk.bf16.mxu1 %vm758_vm0, %v757_v0  ;;  %686 = vmatpush3.bf16.msra.mxu1 %v741_v30 }
  0xea   :  { %687 = vmatprep.subr.bf16.mxu1 %v757_v0 }
  0xed   :  { %688 = vmatpush3.bf16.msra.mxu1 %v742_v31 }
  0xee   :  { %689 = vmatprep.subr.bf16.mxu1 %v757_v0 }
  0xf1   :  { %690 = vmatpush3.bf16.msra.mxu1 %v743_v32 }
  0xf2   :  { %691 = vmatprep.subr.bf16.mxu1 %v757_v0 }
  0xf5   :  { %692 = vmatpush3.bf16.msra.mxu1 %v744_v33 }
  0xf6   :  { %693 = vmatprep.subr.bf16.mxu1 %v757_v0 }
  0xf9   :  { %694 = vmatpush3.bf16.msra.mxu1 %v745_v34 }
  0xfa   :  { %695 = vmatprep.subr.bf16.mxu1 %v757_v0 }
  0xfd   :  { %696 = vmatpush3.bf16.msra.mxu1 %v746_v47 }
  0xfe   :  { %697 = vmatprep.subr.bf16.mxu1 %v757_v0 }
 0x101   :  { %698 = vmatpush3.bf16.msra.mxu1 %v747_v48 }
 0x102   :  { %699 = vmatprep.subr.bf16.mxu1 %v757_v0 }
 0x105   :  { %700 = vmatpush3.bf16.msra.mxu1 %v748_v49 }
 0x1bb   :  { %v192_v36 = vpop.f32.mrb[4].mxu1 }
 0x1bc   :  { %v193_v37 = vadd.f32 %v568_v35, %v192_v36  ;;  %v663_v38 = vpop.f32.mrb[5].mxu1 }
 0x1bd   :  { %v195_v39 = vpop.f32.mrb[6].mxu1 }
 0x1be   :  { %v199_v40 = vmul.f32 0.01, %v193_v37  ;;  %v196_v41 = vadd.f32 %v568_v35, %v195_v39  ;;  %v664_v42 = vpop.f32.mrb[7].mxu1 }
 0x1c0   :  { %v200_v43 = vmul.f32 0.01, %v196_v41  ;;  %v201_v44 = vmax.f32 %v193_v37, %v199_v40 }
 0x1c2   :  { %v202_v45 = vmax.f32 %v196_v41, %v200_v43 }
 0x1c4   :  { %v203_v46 = vpack.c.bf16 %v202_v45, %v201_v44 }
 0x1c6   :  { %682 = vmatmul.mubr.bf16.vlgmr.msra.gmra.mrb[0].mxu0 %v203_v46 }
 0x1c7   :  { %721 = vmatprep.mubr.msk.bf16.mxu0 %vm758_vm0, %v757_v0  ;;  %706 = vmatpush3.bf16.msra.mxu0 %v749_v50 }
 0x1c8   :  { %707 = vmatprep.subr.bf16.mxu0 %v757_v0 }
 0x1cb   :  { %708 = vmatpush3.bf16.msra.mxu0 %v750_v51 }
 0x1cc   :  { %709 = vmatprep.subr.bf16.mxu0 %v757_v0 }
 0x1cf   :  { %710 = vmatpush3.bf16.msra.mxu0 %v751_v52 }
 0x1d0   :  { %711 = vmatprep.subr.bf16.mxu0 %v757_v0 }
 0x1d3   :  { %712 = vmatpush3.bf16.msra.mxu0 %v752_v53 }
 0x1d4   :  { %713 = vmatprep.subr.bf16.mxu0 %v757_v0 }
 0x1d7   :  { %714 = vmatpush3.bf16.msra.mxu0 %v753_v54 }
 0x1d8   :  { %715 = vmatprep.subr.bf16.mxu0 %v757_v0 }
 0x1db   :  { %716 = vmatpush3.bf16.msra.mxu0 %v754_v4 }
 0x1dc   :  { %717 = vmatprep.subr.bf16.mxu0 %v757_v0 }
 0x1df   :  { %718 = vmatpush3.bf16.msra.mxu0 %v755_v5 }
 0x1e0   :  { %719 = vmatprep.subr.bf16.mxu0 %v757_v0 }
 0x1e3   :  { %720 = vmatpush3.bf16.msra.mxu0 %v756_v6 }
 0x299   :  { %v309_v56 = vpop.f32.mrb[0].mxu0 }
 0x29a   :  { %v310_v57 = vadd.f32 %v574_v55, %v309_v56  ;;  %v683_v58 = vpop.f32.mrb[1].mxu0 }
 0x29b   :  { %v312_v59 = vpop.f32.mrb[2].mxu0 }
 0x29c   :  { %v316_v60 = vmul.f32 0.01, %v310_v57  ;;  %v313_v61 = vadd.f32 %v574_v55, %v312_v59  ;;  %v684_v62 = vpop.f32.mrb[3].mxu0 }
 0x29e   :  { %v317_v63 = vmul.f32 0.01, %v313_v61  ;;  %v318_v1 = vmax.f32 %v310_v57, %v316_v60 }
 0x2a0   :  { %v319_v2 = vmax.f32 %v313_v61, %v317_v63 }
 0x2a2   :  { %v320_v3 = vpack.c.bf16 %v319_v2, %v318_v1 }
 0x2a4   :  { %702 = vmatmul.mubr.bf16.vlgmr.msra.gmra.mrb[8].mxu1 %v320_v3 }
 0x377   :  { %v426_v8 = vpop.f32.mrb[8].mxu1 }
 0x378   :  { %v427_v9 = vadd.f32 %v583_v7, %v426_v8  ;;  %v703_v10 = vpop.f32.mrb[9].mxu1 }
 0x379   :  { %v429_v11 = vpop.f32.mrb[10].mxu1 }
 0x37a   :  { %v433_v12 = vmul.f32 0.01, %v427_v9  ;;  %v430_v13 = vadd.f32 %v583_v7, %v429_v11  ;;  %v704_v14 = vpop.f32.mrb[11].mxu1 }
 0x37c   :  { %v434_v15 = vmul.f32 0.01, %v430_v13  ;;  %v435_v16 = vmax.f32 %v427_v9, %v433_v12 }
 0x37e   :  { %v436_v17 = vmax.f32 %v430_v13, %v434_v15 }
 0x380   :  { %v437_v0 = vpack.c.bf16 %v436_v17, %v435_v16 }
 0x382   :  { %722 = vmatmul.mubr.bf16.vlgmr.msra.gmra.mrb[4].mxu0 %v437_v0 }
 0x455   :  { %v543_v19 = vpop.f32.mrb[4].mxu0 }
 0x456   :  { %v723_v20 = vpop.f32.mrb[5].mxu0  ;;  %v544_v22 = vadd.f32 %v592_v18, %v543_v19 }
 0x457   :  { %v546_v21 = vpop.f32.mrb[6].mxu0 }
 0x458   :  { %v547_v23 = vadd.f32 %v592_v18, %v546_v21  ;;  %v724_v24 = vpop.f32.mrb[7].mxu0 }
 0x45a   :  { %v608_v25 = vpack.c.bf16 %v547_v23, %v544_v22 }
 0x45c   :  { %609 = vst [vmem:[%s984_s11] sm:$0xff] %v608_v25  }

</bundles_post_ra>
